<compile_context>
chip_gen: v6e
topology: v6e:2x2x1
jax: 0.10.0
libtpu: 0.0.40
codegen_flags: <defaults>
</compile_context>

<pallas_src>
import jax
import jax.numpy as jnp
from jax.experimental import pallas as pl
from jax.experimental.pallas import tpu as pltpu

NUM_PCLASS = 3   # torch one_hot infers num_classes from data; class 3 present.
LANE = 128       # lane-pad the tiny output dim so stores are unmasked.


def _round_up(n, m):
    return (n + m - 1) // m * m


# ----------------------------------------------------------------------------
# Kernel: fused affine map + sigmoid
# ----------------------------------------------------------------------------
def titanic_kernel(x_ref, w_ref, tbl_ref, y_ref):
    """
    x_ref   : (TB, 1+R) f32, col 0 = pclass in {1..3}, cols 1.. = real features
    w_ref   : (R, Tp)   f32, folded real-feature weight (lane-padded)
    tbl_ref : (3, Tp)   f32, per-pclass folded weight row + total bias
    y_ref   : (TB, Tp)  f32, sigmoid output (only first T lanes meaningful)
    """
    x = x_ref[...]
    idx = x[:, 0:1].astype(jnp.int32) - 1                     # (TB, 1) in 0..2
    real = x[:, 1:]                                           # (TB, R)

    # 3-way select against the folded table (VPU) instead of one-hot matmul;
    # the total bias is already folded into every table row.
    p_term = jnp.where(idx == 0, tbl_ref[0:1, :],
             jnp.where(idx == 1, tbl_ref[1:2, :], tbl_ref[2:3, :]))  # (TB, Tp)

    logits = jnp.dot(real, w_ref[...],
                     preferred_element_type=jnp.float32) + p_term
    y_ref[...] = jax.nn.sigmoid(logits)


# ----------------------------------------------------------------------------
# Host-side (once per parameter set): fold the 3 linears into one affine map
# ----------------------------------------------------------------------------
def fold_params(params):
    """params = (wp, bp, w1, b1, wo, bo) in torch (out, in) layout.
    Returns (w_real_padded (R, Tp), table_padded (3, Tp), num_targets)."""
    wp, bp, w1, b1, wo, bo = params
    E = wp.shape[0]
    wp_t = wp.T                     # (3, E)
    w1_t = w1.T                     # (F, F),  F = E + R
    wo_t = wo.T                     # (F, T)
    w1p = w1_t[:E, :]               # fc1 rows acting on pclass_out
    w1r = w1_t[E:, :]               # fc1 rows acting on real features
    T = wo_t.shape[1]

    w_real = w1r @ wo_t                               # (R, T)
    w_pclass = (wp_t @ w1p) @ wo_t                    # (3, T)
    b_total = (bp @ w1p + b1) @ wo_t + bo             # (T,)
    table = w_pclass + b_total[None, :]               # (3, T)

    Tp = _round_up(max(T, 1), LANE)                   # lane-dense output
    w_real_p = jnp.zeros((w_real.shape[0], Tp), jnp.float32).at[:, :T].set(w_real)
    table_p = jnp.zeros((NUM_PCLASS, Tp), jnp.float32).at[:, :T].set(table)
    return w_real_p, table_p, T


# ----------------------------------------------------------------------------
# Wrapper
# ----------------------------------------------------------------------------
def titanic_forward(x, w_real_p, table_p, num_targets):
    """x: (B, 1+R) f32. Folded weights from fold_params (computed once)."""
    B, C = x.shape
    R = C - 1
    Tp = w_real_p.shape[1]

    # Batch tiling: single step at small B, 512-row tiles at large B.
    TB = min(512, _round_up(B, 8))
    B_pad = _round_up(B, TB)
    if B_pad != B:
        # pad rows with pclass=1 so the in-kernel select stays in range
        pad = jnp.ones((B_pad - B, C), x.dtype)
        x = jnp.concatenate([x, pad], axis=0)

    y = pl.pallas_call(
        titanic_kernel,
        out_shape=jax.ShapeDtypeStruct((B_pad, Tp), jnp.float32),
        grid=(B_pad // TB,),
        in_specs=[
            pl.BlockSpec((TB, C), lambda i: (i, 0)),            # x: tiled over B
            pl.BlockSpec((R, Tp), lambda i: (0, 0)),            # folded weight
            pl.BlockSpec((NUM_PCLASS, Tp), lambda i: (0, 0)),   # folded table
        ],
        out_specs=pl.BlockSpec((TB, Tp), lambda i: (i, 0)),
        compiler_params=pltpu.CompilerParams(
            dimension_semantics=("parallel",)),                 # 2 TCs on v7x
    )(x, w_real_p, table_p)

    return y[:B, :num_targets]


# ----------------------------------------------------------------------------
# Deterministic init + pure-JAX reference of the torch forward
# ----------------------------------------------------------------------------
def _torch_linear_init(key, out_f, in_f):
    k = 1.0 / jnp.sqrt(jnp.float32(in_f))
    kw, kb = jax.random.split(key)
    w = jax.random.uniform(kw, (out_f, in_f), jnp.float32, -k, k)
    b = jax.random.uniform(kb, (out_f,), jnp.float32, -k, k)
    return w, b


def _reference(x, params):
    wp, bp, w1, b1, wo, bo = params
    onehot = jax.nn.one_hot(x[:, 0].astype(jnp.int32) - 1, NUM_PCLASS,
                            dtype=jnp.float32)
    p_out = onehot @ wp.T + bp
    cat = jnp.concatenate([p_out, x[:, 1:]], axis=1)
    h = cat @ w1.T + b1
    return jax.nn.sigmoid(h @ wo.T + bo)


if __name__ == "__main__":
    B = 8            # batch
    R = 6            # real-valued features (x columns 1..6)
    E = 4            # pclass_encoder output dim
    F = E + R        # num_features (fc1 in/out)
    T = 2            # num_targets

    root = jax.random.PRNGKey(0)
    k_x, k_p, k_1, k_o = jax.random.split(root, 4)

    # Input: column 0 = pclass in {1,2,3} (class 3 present), rest random reals.
    pclass = ((jnp.arange(B) % NUM_PCLASS) + 1).astype(jnp.float32).reshape(B, 1)
    real = jax.random.normal(k_x, (B, R), jnp.float32)
    x = jnp.concatenate([pclass, real], axis=1)                 # (B, 1+R)

    # Parameters in torch (out, in) layout.
    wp, bp = _torch_linear_init(k_p, E, NUM_PCLASS)   # pclass_encoder Linear(3, E)
    w1, b1 = _torch_linear_init(k_1, F, F)            # fc1 Linear(F, F)
    wo, bo = _torch_linear_init(k_o, T, F)            # out Linear(F, T)
    params = (wp, bp, w1, b1, wo, bo)

    # Fold weights once (host side), then run the kernel.
    w_real_p, table_p, num_targets = fold_params(params)
    y = titanic_forward(x, w_real_p, table_p, num_targets)
    y = jax.block_until_ready(y)

    y_ref = _reference(x, params)
    assert y.shape == (B, T)
    assert jnp.allclose(y, y_ref, atol=1e-5, rtol=1e-5)

    print("KERNEL_OK")
</pallas_src>

<mosaic_0001>
module attributes {stable_mosaic.version = 11 : i64} {
  func.func @titanic_kernel(%arg0: i32, %arg1: memref<8x7xf32, #tpu.memory_space<vmem>>, %arg2: memref<6x128xf32, #tpu.memory_space<vmem>>, %arg3: memref<3x128xf32, #tpu.memory_space<vmem>>, %arg4: memref<8x128xf32, #tpu.memory_space<vmem>>) attributes {dimension_semantics = [#tpu.dimension_semantics<parallel>], iteration_bounds = array<i64: 1>, scalar_prefetch = 0 : i64, scratch_operands = 0 : i64, tpu.core_type = #tpu.core_type<tc>, window_params = [{transform_indices = @transform_0, window_bounds = array<i64: 8, 7>}, {pipeline_mode = #tpu.pipeline_mode<synchronous>, transform_indices = @transform_1, window_bounds = array<i64: 6, 128>}, {pipeline_mode = #tpu.pipeline_mode<synchronous>, transform_indices = @transform_2, window_bounds = array<i64: 3, 128>}, {transform_indices = @transform_3, window_bounds = array<i64: 8, 128>}]} {
    %c0 = arith.constant 0 : index
    %c0_0 = arith.constant 0 : index
    %0 = vector.load %arg1[%c0, %c0_0] : memref<8x7xf32, #tpu.memory_space<vmem>>, vector<8x7xf32>
    %1 = vector.extract_strided_slice %0 {offsets = [0, 0], sizes = [8, 1], strides = [1, 1]} : vector<8x7xf32> to vector<8x1xf32>
    %2 = arith.fptosi %1 : vector<8x1xf32> to vector<8x1xi32>
    %c1_i32 = arith.constant 1 : i32
    %3 = vector.broadcast %c1_i32 : i32 to vector<8x1xi32>
    %4 = arith.subi %2, %3 : vector<8x1xi32>
    %5 = vector.extract_strided_slice %0 {offsets = [0, 1], sizes = [8, 6], strides = [1, 1]} : vector<8x7xf32> to vector<8x6xf32>
    %c0_i32 = arith.constant 0 : i32
    %6 = vector.broadcast %c0_i32 : i32 to vector<8x1xi32>
    %7 = arith.cmpi eq, %4, %6 : vector<8x1xi32>
    %c0_1 = arith.constant 0 : index
    %c0_2 = arith.constant 0 : index
    %8 = vector.load %arg3[%c0_1, %c0_2] : memref<3x128xf32, #tpu.memory_space<vmem>>, vector<1x128xf32>
    %c1_i32_3 = arith.constant 1 : i32
    %9 = vector.broadcast %c1_i32_3 : i32 to vector<8x1xi32>
    %10 = arith.cmpi eq, %4, %9 : vector<8x1xi32>
    %c1 = arith.constant 1 : index
    %c0_4 = arith.constant 0 : index
    %11 = vector.load %arg3[%c1, %c0_4] : memref<3x128xf32, #tpu.memory_space<vmem>>, vector<1x128xf32>
    %c2 = arith.constant 2 : index
    %c0_5 = arith.constant 0 : index
    %12 = vector.load %arg3[%c2, %c0_5] : memref<3x128xf32, #tpu.memory_space<vmem>>, vector<1x128xf32>
    %13 = vector.shape_cast %10 : vector<8x1xi1> to vector<8x1xi1>
    %14 = vector.broadcast %13 : vector<8x1xi1> to vector<8x128xi1>
    %15 = vector.shape_cast %11 : vector<1x128xf32> to vector<1x128xf32>
    %16 = vector.broadcast %15 : vector<1x128xf32> to vector<8x128xf32>
    %17 = vector.shape_cast %12 : vector<1x128xf32> to vector<1x128xf32>
    %18 = vector.broadcast %17 : vector<1x128xf32> to vector<8x128xf32>
    %19 = arith.select %14, %16, %18 : vector<8x128xi1>, vector<8x128xf32>
    %20 = vector.shape_cast %7 : vector<8x1xi1> to vector<8x1xi1>
    %21 = vector.broadcast %20 : vector<8x1xi1> to vector<8x128xi1>
    %22 = vector.shape_cast %8 : vector<1x128xf32> to vector<1x128xf32>
    %23 = vector.broadcast %22 : vector<1x128xf32> to vector<8x128xf32>
    %24 = arith.select %21, %23, %19 : vector<8x128xi1>, vector<8x128xf32>
    %c0_6 = arith.constant 0 : index
    %c0_7 = arith.constant 0 : index
    %25 = vector.load %arg2[%c0_6, %c0_7] : memref<6x128xf32, #tpu.memory_space<vmem>>, vector<6x128xf32>
    %cst = arith.constant dense<0.000000e+00> : vector<8x128xf32>
    %26 = tpu.matmul %5, %25, %cst {dimension_numbers = #tpu.dot_dimension_numbers<[1], [0], [0], [1], [0, 0, 1, 1], [], []>} : vector<8x6xf32>, vector<6x128xf32>, vector<8x128xf32> -> vector<8x128xf32>
    %27 = arith.addf %26, %24 : vector<8x128xf32>
    %28 = arith.negf %27 : vector<8x128xf32>
    %29 = math.exp %28 : vector<8x128xf32>
    %cst_8 = arith.constant 1.000000e+00 : f32
    %30 = vector.broadcast %cst_8 : f32 to vector<8x128xf32>
    %31 = arith.addf %30, %29 : vector<8x128xf32>
    %32 = arith.divf %30, %31 : vector<8x128xf32>
    %c0_9 = arith.constant 0 : index
    %c0_10 = arith.constant 0 : index
    %33 = vector.load %arg4[%c0_9, %c0_10] : memref<8x128xf32, #tpu.memory_space<vmem>>, vector<8x128xf32>
    tpu.vector_store %arg4[%c0_9, %c0_10], %32 {strides = array<i32>} : memref<8x128xf32, #tpu.memory_space<vmem>>, vector<8x128xf32>,
    return
  }
  func.func @transform_0(%arg0: i32) -> (i32, i32) {
    %c0_i32 = arith.constant 0 : i32
    %c0_i32_0 = arith.constant 0 : i32
    return %arg0, %c0_i32 : i32, i32
  }
  func.func @transform_1(%arg0: i32) -> (i32, i32) {
    %c0_i32 = arith.constant 0 : i32
    %c0_i32_0 = arith.constant 0 : i32
    %c0_i32_1 = arith.constant 0 : i32
    return %c0_i32, %c0_i32_0 : i32, i32
  }
  func.func @transform_2(%arg0: i32) -> (i32, i32) {
    %c0_i32 = arith.constant 0 : i32
    %c0_i32_0 = arith.constant 0 : i32
    %c0_i32_1 = arith.constant 0 : i32
    return %c0_i32, %c0_i32_0 : i32, i32
  }
  func.func @transform_3(%arg0: i32) -> (i32, i32) {
    %c0_i32 = arith.constant 0 : i32
    %c0_i32_0 = arith.constant 0 : i32
    return %arg0, %c0_i32 : i32, i32
  }
}

</mosaic_0001>

<bundles_post_ra>
// kernel: tpu_custom_call.1
= control target key start
LH: loop header
LB: loop body
LE: loop exit
PB: predicated region body
PF: predicated region fallthrough
CT: control target
= control target key end

     0   :  { %8 = vsyncpa [#allocation3], 0  ;;  %s342_s0 = inlined_call_operand.hbm [shape: f32[8,7], index: 0, kind: input, shape index: {}]   ;;  %s343_s1 = inlined_call_operand.hbm [shape: f32[6,128], index: 1, kind: input, shape index: {}]   ;;  %s344_s2 = inlined_call_operand.hbm [shape: f32[3,128], index: 2, kind: input, shape index: {}]   ;;  %s345_s3 = inlined_call_operand.hbm [shape: f32[8,128], index: 3, kind: output, shape index: {}]  }
   0x1   :  { %9 = vsyncpa [#allocation6], 0 }
   0x2   :  { %10 = vsyncpa [#allocation4], 0  ;;  %s302_s12 = smov [#allocation5]   ;;  %s303_s14 = smov [#allocation2]  }
   0x3   :  { %s27_s13 = sshll.u32 %s302_s12, 4  ;;  %s17_s15 = sshll.u32 %s303_s14, 4  ;;  %s28_s13 = int_to_ptr.vmem [resolvable:$true] %s27_s13  ;;  %s18_s15 = int_to_ptr.vmem [resolvable:$true] %s17_s15 }
   0x4   :  { %s224_s16 = scalar_lea.vmem %s28_s13, 128  ;;  %p229_p1 = scmp.lt.s32.totalorder %s28_s13, %s28_s13 }
   0x5   :  { %p225_p0 = scmp.ne.s32.totalorder %s28_s13, %s224_s16  ;;  %p230_p2 = scmp.lt.s32.totalorder %s224_s16, %s224_s16 }
   0x7   :  { %p231_p3 = por %p230_p2, %p229_p1 }
   0x9   :  { %p232_p4 = pnand %p231_p3, %p225_p0 }
   0xb   :  { %235 = shalt.err (!%p232_p4)
}
   0xc   :  { %30 = dma.hbm_to_vmem [thread:$0]  %s343_s1, 128, %s28_s13, [#allocation6]  }
   0xd   :  { %s244_s19 = scalar_lea.vmem %s18_s15, 128  ;;  %p249_p6 = scmp.lt.s32.totalorder %s18_s15, %s18_s15 }
   0xe   :  { %p245_p5 = scmp.ne.s32.totalorder %s18_s15, %s244_s19  ;;  %p250_p7 = scmp.lt.s32.totalorder %s244_s19, %s244_s19 }
  0x10   :  { %p251_p8 = por %p250_p7, %p249_p6 }
  0x12   :  { %p252_p9 = pnand %p251_p8, %p245_p5 }
  0x14   :  { %255 = shalt.err (!%p252_p9)
}
  0x15   :  { %20 = dma.hbm_to_vmem [thread:$0]  %s342_s0, 128, %s18_s15, [#allocation3]  }
  0x16   :  { %s304_s22 = smov [#allocation7]  }
  0x17   :  { %s37_s23 = sshll.u32 %s304_s22, 4  ;;  %s38_s23 = int_to_ptr.vmem [resolvable:$true] %s37_s23 }
  0x18   :  { %s264_s24 = scalar_lea.vmem %s38_s23, 64  ;;  %p269_p11 = scmp.lt.s32.totalorder %s38_s23, %s38_s23 }
  0x19   :  { %p265_p10 = scmp.ne.s32.totalorder %s38_s23, %s264_s24  ;;  %p270_p12 = scmp.lt.s32.totalorder %s264_s24, %s264_s24 }
  0x1b   :  { %p271_p13 = por %p270_p12, %p269_p11 }
  0x1d   :  { %p272_p0 = pnand %p271_p13, %p265_p10 }
  0x1f   :  { %275 = shalt.err (!%p272_p0)
}
  0x20   :  { %40 = dma.hbm_to_vmem [thread:$0]  %s344_s2, 64, %s38_s23, [#allocation6]  }
  0x21   :  { %296 = dma.done.wait [#allocation3], 128  }
  0x22   :  { %297 = vsyncadd [#allocation3], 4294967168 }
  0x23   :  { %298 = dma.done.wait [#allocation6], 192  }
  0x24   :  { %299 = vsyncadd [#allocation6], 4294967104  ;;  %v305_v0 = vmov 0.0   ;;  %vm306_vm0 = vmmov 0   ;;  %v307_v1 = vmov 0   ;;  %vm89_vm1 = vcmask 1045504  }
  0x25   :  { %195 = vmatprep.subr.mxu0 %v305_v0  ;;  %197 = vmatprep.mubr.msk.f32.mxu0 %vm306_vm0, %v305_v0  ;;  %v50_v2 = vld [vmem:[#allocation2] sm:$0xff]  ;;  %v82_v3 = vld [vmem:[#allocation5] sm:$0x3f]  ;;  %s308_s0 = smov 127   ;;  %vm86_vm4 = vcmask 48128   ;;  %s309_s2 = smov [#allocation8]  }
  0x26   :  { %210 = vset.pattern.permute.xlu0 %v307_v1  ;;  %211 = vset.pattern.permute.xlu1 %v307_v1  ;;  %v200_v4 = vtrunc.f32 %v50_v2  ;;  %v187_v11 = vld [vmem:[#allocation7 + $0x1] ss:$0 sm:$0xff]  ;;  %v188_v12 = vld [vmem:[#allocation7 + $0x2] ss:$0 sm:$0xff]  ;;  %v189_v15 = vld [vmem:[#allocation7] ss:$0 sm:$0xff] }
  0x27   :  { %84 = vrot.lane.b32.xlu0 %v50_v2, %s308_s0  ;;  %196 = vmatpush3.msk.msra.mxu0 %vm89_vm1, %v82_v3  ;;  %s176_s26 = sshll.u32 %s309_s2, 4  ;;  %s177_s26 = int_to_ptr.vmem [resolvable:$true] %s176_s26 }
  0x28   :  { %v201_v5 = vcvt.f32.s32 %v200_v4  ;;  %s276_s27 = scalar_lea.vmem %s177_s26, 128  ;;  %p281_p2 = scmp.lt.s32.totalorder %s177_s26, %s177_s26 }
  0x29   :  { %p277_p1 = scmp.ne.s32.totalorder %s177_s26, %s276_s27  ;;  %p282_p3 = scmp.lt.s32.totalorder %s276_s27, %s276_s27 }
  0x2a   :  { %v186_v6 = vadd.s32 4294967295, %v201_v5 }
  0x2b   :  { %p283_p4 = por %p282_p3, %p281_p2 }
  0x2c   :  { %vm55_vm2 = vcmp.eq.s32.totalorder %v186_v6, 1  ;;  %vm53_vm3 = vcmp.eq.s32.totalorder %v186_v6, 0 }
  0x2d   :  { %v58_v7 = vsel %vm55_vm2, 1, %v307_v1  ;;  %v72_v8 = vsel %vm53_vm3, 1, %v307_v1  ;;  %p284_p5 = pnand %p283_p4, %p277_p1 }
  0x2e   :  { %60 = vperm.xlu0 %210, %v58_v7   ;;  %74 = vperm.xlu1 %211, %v72_v8  }
  0x99   :  { %v85_v9 = vpop.permute.xlu0 %84 }
  0x9a   :  { %198 = vmatmul.mubr.msk.f32.vlgmr.msra.gmra.mxu0 %vm86_vm4, %v85_v9 }
  0xa9   :  { %v61_v10 = vpop.permute.xlu0 %60  ;;  %v75_v13 = vpop.permute.xlu1 %74 }
  0xaa   :  { %vm62_vm5 = vcmp.eq.s32.totalorder %v61_v10, 1  ;;  %vm76_vm6 = vcmp.eq.s32.totalorder %v75_v13, 1 }
  0xab   :  { %v71_v14 = vsel %vm62_vm5, %v187_v11, %v188_v12 }
  0xac   :  { %v81_v16 = vsel %vm76_vm6, %v189_v15, %v71_v14 }
 0x15a   :  { %v159_v17 = vpop.f32.mrf.mxu0 }
 0x15b   :  { %v160_v18 = vadd.f32 %v159_v17, %v81_v16 }
 0x15c   :  { %v199_v19 = vpop.f32.mrf.mxu0 }
 0x15d   :  { %v192_v20 = vmul.f32 -1.442695, %v160_v18 }
 0x15f   :  { %212 = vpow2.f32 %v192_v20 }
 0x16c   :  { %v213_v21 = vpop.eup %212 }
 0x16d   :  { %v166_v22 = vadd.f32 1.0, %v213_v21 }
 0x16f   :  { %214 = vrcp.f32 %v166_v22 }
 0x17c   :  { %v215_v23 = vpop.eup %214 }
 0x17d   :  { %169 = vst [vmem:[#allocation8] sm:$0xff] %v215_v23 }
 0x17e   :  { %287 = shalt.err (!%p284_p5)
}
 0x17f   :  { %179 = dma.vmem_to_hbm [thread:$0]  %s177_s26, 128, %s345_s3, [#allocation4]  }
 0x180   :  { %300 = dma.done.wait [#allocation4], 128  }
 0x181   :  { %301 = vsyncadd [#allocation4], 4294967168 }
 0x182   :  { %183 = vsyncpa [#allocation3], 1 }
 0x183   :  { %184 = vsyncpa [#allocation6], 1 }
 0x184   :  { %185 = vsyncpa [#allocation4], 1 }

</bundles_post_ra>
